<compile_context>
chip_gen: v6e
topology: v6e:2x2x1
jax: 0.10.0
libtpu: 0.0.40
codegen_flags: <defaults>
</compile_context>

<pallas_src>
import math

import jax
import jax.numpy as jnp
from jax.experimental import pallas as pl
from jax.experimental.pallas import tpu as pltpu


def _exp_map_kernel(x_ref, v_ref, o_ref):
    # Euclidean exponential map: exp_x(v) = x + v  (pure elementwise, VPU).
    o_ref[...] = x_ref[...] + v_ref[...]


def _round_up(n: int, m: int) -> int:
    return ((n + m - 1) // m) * m


_LANE_CANDIDATES = (2048, 1024, 512, 256, 128)
_MIN_TRAFFIC_BYTES = 4 << 20      # below ~4 MiB of 2R+1W traffic, XLA's add wins
_VMEM_LIMIT_CAP = 56 << 20        # safe under v7x's 64 MiB physical VMEM


def _tpu_kind() -> str:
    try:
        return jax.devices()[0].device_kind.lower()
    except Exception:
        return ""


def euclidean_exponential(
    x: jax.Array,
    v: jax.Array,
    *,
    force_pallas: bool = False,
    donate_x: bool = False,
) -> jax.Array:
    """Euclidean exponential map exp_x(v) = x + v via a Pallas TPU kernel."""
    assert x.shape == v.shape, "x and v must have the same shape"
    assert x.dtype == v.dtype, "x and v must have the same dtype"

    orig_shape = x.shape
    total = math.prod(orig_shape) if orig_shape else 1
    if total == 0:
        return x + v

    itemsize = jnp.dtype(x.dtype).itemsize
    if not force_pallas and 3 * total * itemsize < _MIN_TRAFFIC_BYTES:
        # Tiny input: pallas_call launch + pipeline prologue dominates.
        return x + v

    # Dtype-aware sublane multiple (f32: 8, bf16: 16, int8/fp8: 32).
    sublane = {4: 8, 2: 16, 1: 32}.get(itemsize, 8)

    # ---- Lane-dense slab with NO padding on the common path ----
    lane = next((c for c in _LANE_CANDIDATES if total % c == 0), None)
    if lane is None:
        # Ragged fallback (rare): pad the flat tail.
        lane = 512
        padded_total = _round_up(total, lane * sublane)
    else:
        padded_total = total
    pad = padded_total - total

    xf = x.reshape(-1)
    vf = v.reshape(-1)
    if pad:
        xf = jnp.pad(xf, (0, pad))
        vf = jnp.pad(vf, (0, pad))
    rows = padded_total // lane
    x2 = xf.reshape(rows, lane)
    v2 = vf.reshape(rows, lane)

    # ---- Generation-aware tile sizing ----
    kind = _tpu_kind()
    two_cores = ("v4" in kind) or ("v5p" in kind) or ("v7" in kind)
    is_v5e = ("v5e" in kind) or ("v5 lite" in kind) or ("v5lite" in kind)
    target_block_bytes = (4 << 20) if is_v5e else (8 << 20)

    row_bytes = lane * itemsize
    tile_rows = max(sublane, (target_block_bytes // row_bytes) // sublane * sublane)

    if two_cores and rows >= 4 * sublane:
        # >= 2 blocks per TensorCore: both cores busy and still pipelined.
        tile_rows = min(tile_rows, _round_up(pl.cdiv(rows, 4), sublane))

    if tile_rows >= rows:
        tile_rows = rows  # single block == full array dims (always legal)

    grid = (pl.cdiv(rows, tile_rows),)

    block_bytes = tile_rows * lane * itemsize
    vmem_limit = int(min(_VMEM_LIMIT_CAP, max(32 << 20, 3 * 2 * block_bytes + (8 << 20))))

    cost = pl.CostEstimate(
        flops=rows * lane,
        transcendentals=0,
        bytes_accessed=3 * rows * lane * itemsize,
    )

    out = pl.pallas_call(
        _exp_map_kernel,
        out_shape=jax.ShapeDtypeStruct((rows, lane), x.dtype),
        grid_spec=pltpu.PrefetchScalarGridSpec(
            num_scalar_prefetch=0,
            grid=grid,
            in_specs=[
                pl.BlockSpec((tile_rows, lane), lambda i: (i, 0)),
                pl.BlockSpec((tile_rows, lane), lambda i: (i, 0)),
            ],
            out_specs=pl.BlockSpec((tile_rows, lane), lambda i: (i, 0)),
        ),
        compiler_params=pltpu.CompilerParams(
            dimension_semantics=("parallel",),
            vmem_limit_bytes=vmem_limit,
        ),
        cost_estimate=cost,
        input_output_aliases=({0: 0} if donate_x else {}),
    )(x2, v2)

    out_flat = out.reshape(-1)
    if pad:
        out_flat = out_flat[:total]
    return out_flat.reshape(orig_shape)


if __name__ == "__main__":
    # EuclideanExponential(dim=32) — no learnable parameters in __init__.
    key = jax.random.PRNGKey(0)
    kx, kv, kx2, kv2, kx3, kv3 = jax.random.split(key, 6)

    # Small shape implied by the module (batch=2, seq=8, dim=32).
    # Force the Pallas path so the kernel itself is exercised; total=512 is a
    # multiple of 128, so even this tiny case takes the no-pad path.
    x_s = jax.random.normal(kx, (2, 8, 32), dtype=jnp.float32)
    v_s = jax.random.normal(kv, (2, 8, 32), dtype=jnp.float32)
    o_s = jax.block_until_ready(euclidean_exponential(x_s, v_s, force_pallas=True))
    assert o_s.shape == x_s.shape and o_s.dtype == x_s.dtype
    assert jnp.allclose(o_s, x_s + v_s, atol=1e-6, rtol=1e-6)

    # bf16 small case: exercises dtype-aware sublane rounding (16).
    x_b = jax.random.normal(kx2, (4, 256, 64), dtype=jnp.bfloat16)
    v_b = jax.random.normal(kv2, (4, 256, 64), dtype=jnp.bfloat16)
    o_b = jax.block_until_ready(euclidean_exponential(x_b, v_b, force_pallas=True))
    assert o_b.shape == x_b.shape and o_b.dtype == x_b.dtype
    assert jnp.allclose(
        o_b.astype(jnp.float32), (x_b + v_b).astype(jnp.float32), atol=1e-2, rtol=1e-2
    )

    # Moderate shape that clears the traffic gate: default no-pad, tiled path
    # (and the >=4-block megacore split when running on a 2-TensorCore chip).
    x_m = jax.random.normal(kx3, (8, 1024, 128), dtype=jnp.float32)
    v_m = jax.random.normal(kv3, (8, 1024, 128), dtype=jnp.float32)
    o_m = jax.block_until_ready(euclidean_exponential(x_m, v_m))
    assert o_m.shape == x_m.shape and o_m.dtype == x_m.dtype
    assert jnp.allclose(o_m, x_m + v_m, atol=1e-6, rtol=1e-6)

    print("KERNEL_OK")
</pallas_src>

<mosaic_0001>
module attributes {stable_mosaic.version = 11 : i64} {
  func.func @_exp_map_kernel(%arg0: i32, %arg1: memref<1x512xf32, #tpu.memory_space<vmem>>, %arg2: memref<1x512xf32, #tpu.memory_space<vmem>>, %arg3: memref<1x512xf32, #tpu.memory_space<vmem>>) attributes {dimension_semantics = [#tpu.dimension_semantics<parallel>], iteration_bounds = array<i64: 1>, scalar_prefetch = 0 : i64, scratch_operands = 0 : i64, tpu.core_type = #tpu.core_type<tc>, window_params = [{transform_indices = @transform_0, window_bounds = array<i64: 1, 512>}, {transform_indices = @transform_1, window_bounds = array<i64: 1, 512>}, {transform_indices = @transform_2, window_bounds = array<i64: 1, 512>}]} {
    %c0 = arith.constant 0 : index
    %c0_0 = arith.constant 0 : index
    %0 = vector.load %arg1[%c0, %c0_0] : memref<1x512xf32, #tpu.memory_space<vmem>>, vector<1x512xf32>
    %c0_1 = arith.constant 0 : index
    %c0_2 = arith.constant 0 : index
    %1 = vector.load %arg2[%c0_1, %c0_2] : memref<1x512xf32, #tpu.memory_space<vmem>>, vector<1x512xf32>
    %2 = arith.addf %0, %1 : vector<1x512xf32>
    %c0_3 = arith.constant 0 : index
    %c0_4 = arith.constant 0 : index
    %3 = vector.load %arg3[%c0_3, %c0_4] : memref<1x512xf32, #tpu.memory_space<vmem>>, vector<1x512xf32>
    tpu.vector_store %arg3[%c0_3, %c0_4], %2 {strides = array<i32>} : memref<1x512xf32, #tpu.memory_space<vmem>>, vector<1x512xf32>,
    return
  }
  func.func @transform_0(%arg0: i32) -> (i32, i32) {
    %c0_i32 = arith.constant 0 : i32
    %c0_i32_0 = arith.constant 0 : i32
    return %arg0, %c0_i32 : i32, i32
  }
  func.func @transform_1(%arg0: i32) -> (i32, i32) {
    %c0_i32 = arith.constant 0 : i32
    %c0_i32_0 = arith.constant 0 : i32
    return %arg0, %c0_i32 : i32, i32
  }
  func.func @transform_2(%arg0: i32) -> (i32, i32) {
    %c0_i32 = arith.constant 0 : i32
    %c0_i32_0 = arith.constant 0 : i32
    return %arg0, %c0_i32 : i32, i32
  }
}

</mosaic_0001>

<bundles_post_ra>
// kernel: tpu_custom_call.1
= control target key start
LH: loop header
LB: loop body
LE: loop exit
PB: predicated region body
PF: predicated region fallthrough
CT: control target
= control target key end

     0   :  { %7 = vsyncpa [#allocation3], 0  ;;  %s156_s0 = inlined_call_operand.hbm [shape: f32[1,512], index: 0, kind: input, shape index: {}]   ;;  %s157_s1 = inlined_call_operand.hbm [shape: f32[1,512], index: 1, kind: input, shape index: {}]   ;;  %s158_s2 = inlined_call_operand.hbm [shape: f32[1,512], index: 2, kind: output, shape index: {}]  }
   0x1   :  { %8 = vsyncpa [#allocation6], 0 }
   0x2   :  { %9 = vsyncpa [#allocation4], 0  ;;  %s129_s9 = smov [#allocation2]   ;;  %s130_s11 = smov [#allocation5]  }
   0x3   :  { %s16_s10 = sshll.u32 %s129_s9, 4  ;;  %s26_s12 = sshll.u32 %s130_s11, 4  ;;  %s17_s10 = int_to_ptr.vmem [resolvable:$true] %s16_s10  ;;  %s27_s12 = int_to_ptr.vmem [resolvable:$true] %s26_s12 }
   0x4   :  { %s71_s13 = scalar_lea.vmem %s17_s10, 64  ;;  %p76_p1 = scmp.lt.s32.totalorder %s17_s10, %s17_s10 }
   0x5   :  { %p72_p0 = scmp.ne.s32.totalorder %s17_s10, %s71_s13  ;;  %p77_p2 = scmp.lt.s32.totalorder %s71_s13, %s71_s13 }
   0x7   :  { %p78_p3 = por %p77_p2, %p76_p1 }
   0x9   :  { %p79_p4 = pnand %p78_p3, %p72_p0 }
   0xb   :  { %82 = shalt.err (!%p79_p4)
}
   0xc   :  { %19 = dma.hbm_to_vmem [thread:$0]  %s156_s0, 64, %s17_s10, [#allocation3]  }
   0xd   :  { %s91_s16 = scalar_lea.vmem %s27_s12, 64  ;;  %p96_p6 = scmp.lt.s32.totalorder %s27_s12, %s27_s12 }
   0xe   :  { %p92_p5 = scmp.ne.s32.totalorder %s27_s12, %s91_s16  ;;  %p97_p7 = scmp.lt.s32.totalorder %s91_s16, %s91_s16 }
  0x10   :  { %p98_p8 = por %p97_p7, %p96_p6 }
  0x12   :  { %p99_p9 = pnand %p98_p8, %p92_p5 }
  0x14   :  { %102 = shalt.err (!%p99_p9)
}
  0x15   :  { %29 = dma.hbm_to_vmem [thread:$0]  %s157_s1, 64, %s27_s12, [#allocation6]  }
  0x16   :  { %123 = dma.done.wait [#allocation3], 64  }
  0x17   :  { %124 = vsyncadd [#allocation3], 4294967232 }
  0x18   :  { %125 = dma.done.wait [#allocation6], 64  }
  0x19   :  { %126 = vsyncadd [#allocation6], 4294967232  ;;  %v39_v0 = vlaneseq  ;;  %s131_s19 = smov [#allocation7]   ;;  %v36_v1 = vld [vmem:[#allocation2] sm:$0xf] }
  0x1a   :  { %s50_s20 = sshll.u32 %s131_s19, 4  ;;  %v37_v2 = vld [vmem:[#allocation5] sm:$0xf]  ;;  %s51_s20 = int_to_ptr.vmem [resolvable:$true] %s50_s20 }
  0x1b   :  { %vm41_vm0 = vcmp.lt.s32.totalorder %v39_v0, 512  ;;  %v38_v3 = vadd.f32 %v37_v2, %v36_v1  ;;  %s103_s0 = scalar_lea.vmem %s51_s20, 64  ;;  %p108_p11 = scmp.lt.s32.totalorder %s51_s20, %s51_s20 }
  0x1c   :  { %p104_p10 = scmp.ne.s32.totalorder %s51_s20, %s103_s0  ;;  %p109_p12 = scmp.lt.s32.totalorder %s103_s0, %s103_s0 }
  0x1d   :  { %43 = vst.msk [vmem:[#allocation7] sm:$0xf] %vm41_vm0, %v38_v3 }
  0x1e   :  { %p110_p13 = por %p109_p12, %p108_p11 }
  0x20   :  { %p111_p0 = pnand %p110_p13, %p104_p10 }
  0x22   :  { %114 = shalt.err (!%p111_p0)
}
  0x23   :  { %53 = dma.vmem_to_hbm [thread:$0]  %s51_s20, 64, %s158_s2, [#allocation4]  }
  0x24   :  { %127 = dma.done.wait [#allocation4], 64  }
  0x25   :  { %128 = vsyncadd [#allocation4], 4294967232 }
  0x26   :  { %57 = vsyncpa [#allocation3], 1 }
  0x27   :  { %58 = vsyncpa [#allocation6], 1 }
  0x28   :  { %59 = vsyncpa [#allocation4], 1 }

</bundles_post_ra>
